<compile_context>
chip_gen: v7x
topology: tpu7x:2x2x1
jax: 0.10.0
libtpu: 0.0.40
codegen_flags: <defaults>
</compile_context>

<pallas_src>
import functools

import jax
import jax.numpy as jnp
from jax.experimental import pallas as pl
from jax.experimental.pallas import tpu as pltpu

_LANE = 128
_SUBLANE = 8


def _round_up(n, m):
    return ((n + m - 1) // m) * m


def _leaky_relu(x, slope=0.2):
    return jnp.where(x > 0, x, slope * x)


# ----------------------------------------------------------------------------
# Kernel: the whole forward for one batch tile; all params VMEM-resident.
# ----------------------------------------------------------------------------
def _vae_kernel(x_ref, eps_ref, w_ref, b_ref, xo_ref, mean_ref, var_ref, *, meta):
    """meta: 7 tuples (in_rows, col_offset, out_cols) into the packed slabs, in
    layer order: enc1, enc2, mean, var, dec1, dec2, dec3."""
    f32 = jnp.float32
    w_dtype = w_ref.dtype

    def dense(h, idx):
        k, c0, n = meta[idx]
        w = w_ref[0:k, c0:c0 + n]                      # static, 128-aligned col slice
        b = b_ref[0:1, c0:c0 + n].astype(f32)
        # Feed the MXU in the packed parameter dtype (bf16 on the bf16 path),
        # accumulate in f32.
        return jnp.dot(h.astype(w_dtype), w, preferred_element_type=f32) + b

    # ---- encoder: Linear -> LeakyReLU(0.2) -> Linear -> LeakyReLU(0.2)
    h = _leaky_relu(dense(x_ref[...], 0))
    h = _leaky_relu(dense(h, 1))

    # ---- mean / var heads (narrow N; single MXU pass each)
    mean = dense(h, 2)
    var = dense(h, 3)

    # ---- reparameterization (matches the PyTorch module): z = mean + var * eps
    z = mean + var * eps_ref[...].astype(f32)

    # ---- decoder: Linear -> LReLU -> Linear -> LReLU -> Linear -> Sigmoid
    d = _leaky_relu(dense(z, 4))
    d = _leaky_relu(dense(d, 5))
    logits = dense(d, 6)

    xo_ref[...] = jax.nn.sigmoid(logits).astype(xo_ref.dtype)
    mean_ref[...] = mean.astype(mean_ref.dtype)
    var_ref[...] = var.astype(var_ref.dtype)


# ----------------------------------------------------------------------------
# Parameter packing: 7 layers -> one weight slab (param dtype, 128-aligned
# column slots) + one f32 bias slab.
# ----------------------------------------------------------------------------
def pack_params(params, input_size, encoding_size, *, param_dtype=jnp.float32):
    D, E = input_size, encoding_size
    layers = [("w1", "b1"), ("w2", "b2"), ("wm", "bm"), ("wv", "bv"),
              ("wd1", "bd1"), ("wd2", "bd2"), ("wd3", "bd3")]
    shapes = [(D, 64), (64, 32), (32, E), (32, E), (E, 32), (32, 64), (64, D)]

    rmax = _round_up(max(k for k, _ in shapes), _SUBLANE)
    slots = [_round_up(n, _LANE) for _, n in shapes]
    wtot = sum(slots)

    w_slab = jnp.zeros((rmax, wtot), param_dtype)
    b_slab = jnp.zeros((1, wtot), jnp.float32)   # biases stay f32 (VMEM-resident)
    meta = []
    off = 0
    for (wn, bn), (k, n), slot in zip(layers, shapes, slots):
        w_slab = w_slab.at[:k, off:off + n].set(params[wn].astype(param_dtype))
        b_slab = b_slab.at[:, off:off + n].set(
            params[bn].astype(jnp.float32).reshape(1, n))
        meta.append((k, off, n))
        off += slot
    return w_slab, b_slab, tuple(meta)


# ----------------------------------------------------------------------------
# Wrapper: batch grid only; natural feature dims; VMEM budgeting.
# ----------------------------------------------------------------------------
def _choose_tm(batch, tm_req):
    b8 = _round_up(batch, _SUBLANE)
    tm = max(_SUBLANE, min(_round_up(tm_req, _SUBLANE), b8))
    # v7x has two TensorCores: keep >= 2 grid steps when the batch allows so
    # the ("parallel",) grid axis can be sharded across both.
    if b8 // tm < 2 and b8 >= 2 * _SUBLANE:
        tm = _round_up((b8 + 1) // 2, _SUBLANE)
    b_pad = _round_up(b8, tm)
    return tm, b_pad


def vae_forward(x, eps, params, *, tm=512, io_dtype=None, param_dtype=None):
    B, D = x.shape
    E = eps.shape[1]
    io_dtype = jnp.dtype(io_dtype) if io_dtype is not None else jnp.dtype(x.dtype)
    param_dtype = jnp.dtype(param_dtype) if param_dtype is not None else io_dtype

    w_slab, b_slab, meta = pack_params(params, D, E, param_dtype=param_dtype)
    rmax, wtot = w_slab.shape

    tm, b_pad = _choose_tm(B, tm)
    x_in = x.astype(io_dtype)
    eps_in = eps.astype(io_dtype)
    if b_pad != B:  # pad only the batch dim, and only when actually needed
        x_in = jnp.pad(x_in, ((0, b_pad - B), (0, 0)))
        eps_in = jnp.pad(eps_in, ((0, b_pad - B), (0, 0)))

    grid = (b_pad // tm,)
    kernel = functools.partial(_vae_kernel, meta=meta)

    # VMEM footprint: double-buffered streaming tiles + resident slabs + f32
    # temporaries, generous headroom, capped well under v7x's 64 MiB.
    Dl, El = _round_up(D, _LANE), _round_up(E, _LANE)
    io_sz, p_sz = io_dtype.itemsize, param_dtype.itemsize
    foot = 2 * io_sz * tm * (Dl + El)              # x, eps tiles (double-buffered)
    foot += 2 * io_sz * tm * (Dl + 2 * El)         # recon, mean, var tiles
    foot += 2 * (p_sz * rmax * wtot + 4 * _SUBLANE * wtot)   # weight + bias slabs
    foot += 8 * 4 * tm * max(Dl, _LANE)            # f32 intermediates
    vmem_limit = int(min(max(3 * foot, 16 << 20), 48 << 20))

    recon, mean, var = pl.pallas_call(
        kernel,
        out_shape=(jax.ShapeDtypeStruct((b_pad, D), io_dtype),
                   jax.ShapeDtypeStruct((b_pad, E), io_dtype),
                   jax.ShapeDtypeStruct((b_pad, E), io_dtype)),
        grid=grid,
        in_specs=[
            pl.BlockSpec((tm, D), lambda i: (i, 0)),       # x tile (streams)
            pl.BlockSpec((tm, E), lambda i: (i, 0)),       # eps tile (streams)
            pl.BlockSpec((rmax, wtot), lambda i: (0, 0)),  # weight slab (resident)
            pl.BlockSpec((1, wtot), lambda i: (0, 0)),     # bias slab (resident)
        ],
        out_specs=(
            pl.BlockSpec((tm, D), lambda i: (i, 0)),       # reconstruction
            pl.BlockSpec((tm, E), lambda i: (i, 0)),       # mean
            pl.BlockSpec((tm, E), lambda i: (i, 0)),       # var
        ),
        compiler_params=pltpu.CompilerParams(
            dimension_semantics=("parallel",),
            vmem_limit_bytes=vmem_limit,
        ),
    )(x_in, eps_in, w_slab, b_slab)

    if b_pad != B:
        recon, mean, var = recon[:B], mean[:B], var[:B]
    return recon, mean, var


# ----------------------------------------------------------------------------
# PyTorch-Linear-style init + pure-JAX reference (for correctness checking).
# ----------------------------------------------------------------------------
def init_params(key, input_size, encoding_size, dtype=jnp.float32):
    """U(-1/sqrt(fan_in), 1/sqrt(fan_in)); weights stored (in, out), bias (1, out)."""
    dims = [
        ("w1", "b1", input_size, 64),
        ("w2", "b2", 64, 32),
        ("wm", "bm", 32, encoding_size),
        ("wv", "bv", 32, encoding_size),
        ("wd1", "bd1", encoding_size, 32),
        ("wd2", "bd2", 32, 64),
        ("wd3", "bd3", 64, input_size),
    ]
    params = {}
    keys = jax.random.split(key, 2 * len(dims))
    for i, (wname, bname, fan_in, fan_out) in enumerate(dims):
        bound = 1.0 / float(fan_in) ** 0.5
        params[wname] = jax.random.uniform(
            keys[2 * i], (fan_in, fan_out), dtype, -bound, bound)
        params[bname] = jax.random.uniform(
            keys[2 * i + 1], (1, fan_out), dtype, -bound, bound)
    return params


def vae_forward_ref(x, eps, p):
    h = _leaky_relu(x @ p["w1"] + p["b1"])
    h = _leaky_relu(h @ p["w2"] + p["b2"])
    mean = h @ p["wm"] + p["bm"]
    var = h @ p["wv"] + p["bv"]
    z = mean + var * eps
    d = _leaky_relu(z @ p["wd1"] + p["bd1"])
    d = _leaky_relu(d @ p["wd2"] + p["bd2"])
    xo = jax.nn.sigmoid(d @ p["wd3"] + p["bd3"])
    return xo, mean, var


def _quantize(t, dtype):
    return jnp.asarray(t).astype(dtype).astype(jnp.float32)


if __name__ == "__main__":
    input_size = 64
    encoding_size = 16
    batch = 8

    key = jax.random.PRNGKey(0)
    k_x, k_eps, k_p = jax.random.split(key, 3)

    x = jax.random.uniform(k_x, (batch, input_size), jnp.float32)        # data in [0,1)
    eps = jax.random.normal(k_eps, (batch, encoding_size), jnp.float32)  # randn_like(var)
    params = init_params(k_p, input_size, encoding_size)

    # --- small f32 run, checked against the pure-JAX reference.
    recon, mean, var = vae_forward(x, eps, params)
    jax.block_until_ready((recon, mean, var))
    r_ref, m_ref, v_ref = vae_forward_ref(x, eps, params)
    assert recon.shape == (batch, input_size)
    assert mean.shape == (batch, encoding_size) and var.shape == (batch, encoding_size)
    # tolerance covers possible matmul-precision-path differences (DEFAULT f32
    # dot may use bf16 MXU passes) while still catching structural errors.
    assert float(jnp.max(jnp.abs(recon - r_ref))) < 2e-2
    assert float(jnp.max(jnp.abs(mean - m_ref))) < 2e-2
    assert float(jnp.max(jnp.abs(var - v_ref))) < 2e-2

    # --- larger batched run with bf16 I/O + bf16 MXU feeds (memory-bound
    #     regime); activations / reparam / sigmoid stay f32 inside the kernel.
    batch2 = 2048
    x2 = jax.random.uniform(k_x, (batch2, input_size), jnp.float32)
    eps2 = jax.random.normal(k_eps, (batch2, encoding_size), jnp.float32)
    r2, m2, v2 = vae_forward(x2, eps2, params, tm=512, io_dtype=jnp.bfloat16)
    jax.block_until_ready((r2, m2, v2))

    qp = dict(params)
    for wn in ("w1", "w2", "wm", "wv", "wd1", "wd2", "wd3"):   # weights quantized, biases f32
        qp[wn] = _quantize(params[wn], jnp.bfloat16)
    r2_ref, m2_ref, v2_ref = vae_forward_ref(
        _quantize(x2, jnp.bfloat16), _quantize(eps2, jnp.bfloat16), qp)
    assert r2.shape == (batch2, input_size)
    assert m2.shape == (batch2, encoding_size) and v2.shape == (batch2, encoding_size)
    assert float(jnp.max(jnp.abs(r2.astype(jnp.float32) - r2_ref))) < 5e-2
    assert float(jnp.max(jnp.abs(m2.astype(jnp.float32) - m2_ref))) < 5e-2
    assert float(jnp.max(jnp.abs(v2.astype(jnp.float32) - v2_ref))) < 5e-2

    print("KERNEL_OK")
</pallas_src>

<mosaic_0001>
module attributes {stable_mosaic.version = 11 : i64} {
  func.func @_vae_kernel(%arg0: i32, %arg1: memref<8x64xf32, #tpu.memory_space<vmem>>, %arg2: memref<8x16xf32, #tpu.memory_space<vmem>>, %arg3: memref<64x896xf32, #tpu.memory_space<vmem>>, %arg4: memref<1x896xf32, #tpu.memory_space<vmem>>, %arg5: memref<8x64xf32, #tpu.memory_space<vmem>>, %arg6: memref<8x16xf32, #tpu.memory_space<vmem>>, %arg7: memref<8x16xf32, #tpu.memory_space<vmem>>) attributes {dimension_semantics = [#tpu.dimension_semantics<parallel>], iteration_bounds = array<i64: 1>, scalar_prefetch = 0 : i64, scratch_operands = 0 : i64, tpu.core_type = #tpu.core_type<tc>, window_params = [{transform_indices = @transform_0, window_bounds = array<i64: 8, 64>}, {transform_indices = @transform_1, window_bounds = array<i64: 8, 16>}, {pipeline_mode = #tpu.pipeline_mode<synchronous>, transform_indices = @transform_2, window_bounds = array<i64: 64, 896>}, {pipeline_mode = #tpu.pipeline_mode<synchronous>, transform_indices = @transform_3, window_bounds = array<i64: 1, 896>}, {transform_indices = @transform_4, window_bounds = array<i64: 8, 64>}, {transform_indices = @transform_5, window_bounds = array<i64: 8, 16>}, {transform_indices = @transform_6, window_bounds = array<i64: 8, 16>}]} {
    %c0 = arith.constant 0 : index
    %c0_0 = arith.constant 0 : index
    %0 = vector.load %arg1[%c0, %c0_0] : memref<8x64xf32, #tpu.memory_space<vmem>>, vector<8x64xf32>
    %c0_1 = arith.constant 0 : index
    %c0_2 = arith.constant 0 : index
    %1 = vector.load %arg3[%c0_1, %c0_2] : memref<64x896xf32, #tpu.memory_space<vmem>>, vector<64x64xf32>
    %c0_3 = arith.constant 0 : index
    %c0_4 = arith.constant 0 : index
    %2 = vector.load %arg4[%c0_3, %c0_4] : memref<1x896xf32, #tpu.memory_space<vmem>>, vector<1x64xf32>
    %cst = arith.constant dense<0.000000e+00> : vector<8x64xf32>
    %3 = tpu.matmul %0, %1, %cst {dimension_numbers = #tpu.dot_dimension_numbers<[1], [0], [0], [1], [0, 0, 1, 1], [], []>} : vector<8x64xf32>, vector<64x64xf32>, vector<8x64xf32> -> vector<8x64xf32>
    %4 = vector.broadcast %2 : vector<1x64xf32> to vector<8x64xf32>
    %5 = arith.addf %3, %4 : vector<8x64xf32>
    %cst_5 = arith.constant 0.000000e+00 : f32
    %6 = vector.broadcast %cst_5 : f32 to vector<8x64xf32>
    %7 = arith.cmpf ogt, %5, %6 : vector<8x64xf32>
    %cst_6 = arith.constant 2.000000e-01 : f32
    %8 = vector.broadcast %cst_6 : f32 to vector<8x64xf32>
    %9 = arith.mulf %8, %5 : vector<8x64xf32>
    %10 = arith.select %7, %5, %9 : vector<8x64xi1>, vector<8x64xf32>
    %c0_7 = arith.constant 0 : index
    %c128 = arith.constant 128 : index
    %11 = vector.load %arg3[%c0_7, %c128] : memref<64x896xf32, #tpu.memory_space<vmem>>, vector<64x32xf32>
    %c0_8 = arith.constant 0 : index
    %c128_9 = arith.constant 128 : index
    %12 = vector.load %arg4[%c0_8, %c128_9] : memref<1x896xf32, #tpu.memory_space<vmem>>, vector<1x32xf32>
    %cst_10 = arith.constant dense<0.000000e+00> : vector<8x32xf32>
    %13 = tpu.matmul %10, %11, %cst_10 {dimension_numbers = #tpu.dot_dimension_numbers<[1], [0], [0], [1], [0, 0, 1, 1], [], []>} : vector<8x64xf32>, vector<64x32xf32>, vector<8x32xf32> -> vector<8x32xf32>
    %14 = vector.broadcast %12 : vector<1x32xf32> to vector<8x32xf32>
    %15 = arith.addf %13, %14 : vector<8x32xf32>
    %cst_11 = arith.constant 0.000000e+00 : f32
    %16 = vector.broadcast %cst_11 : f32 to vector<8x32xf32>
    %17 = arith.cmpf ogt, %15, %16 : vector<8x32xf32>
    %cst_12 = arith.constant 2.000000e-01 : f32
    %18 = vector.broadcast %cst_12 : f32 to vector<8x32xf32>
    %19 = arith.mulf %18, %15 : vector<8x32xf32>
    %20 = arith.select %17, %15, %19 : vector<8x32xi1>, vector<8x32xf32>
    %c0_13 = arith.constant 0 : index
    %c256 = arith.constant 256 : index
    %21 = vector.load %arg3[%c0_13, %c256] : memref<64x896xf32, #tpu.memory_space<vmem>>, vector<32x16xf32>
    %c0_14 = arith.constant 0 : index
    %c256_15 = arith.constant 256 : index
    %22 = vector.load %arg4[%c0_14, %c256_15] : memref<1x896xf32, #tpu.memory_space<vmem>>, vector<1x16xf32>
    %cst_16 = arith.constant dense<0.000000e+00> : vector<8x16xf32>
    %23 = tpu.matmul %20, %21, %cst_16 {dimension_numbers = #tpu.dot_dimension_numbers<[1], [0], [0], [1], [0, 0, 1, 1], [], []>} : vector<8x32xf32>, vector<32x16xf32>, vector<8x16xf32> -> vector<8x16xf32>
    %24 = vector.broadcast %22 : vector<1x16xf32> to vector<8x16xf32>
    %25 = arith.addf %23, %24 : vector<8x16xf32>
    %c0_17 = arith.constant 0 : index
    %c384 = arith.constant 384 : index
    %26 = vector.load %arg3[%c0_17, %c384] : memref<64x896xf32, #tpu.memory_space<vmem>>, vector<32x16xf32>
    %c0_18 = arith.constant 0 : index
    %c384_19 = arith.constant 384 : index
    %27 = vector.load %arg4[%c0_18, %c384_19] : memref<1x896xf32, #tpu.memory_space<vmem>>, vector<1x16xf32>
    %cst_20 = arith.constant dense<0.000000e+00> : vector<8x16xf32>
    %28 = tpu.matmul %20, %26, %cst_20 {dimension_numbers = #tpu.dot_dimension_numbers<[1], [0], [0], [1], [0, 0, 1, 1], [], []>} : vector<8x32xf32>, vector<32x16xf32>, vector<8x16xf32> -> vector<8x16xf32>
    %29 = vector.broadcast %27 : vector<1x16xf32> to vector<8x16xf32>
    %30 = arith.addf %28, %29 : vector<8x16xf32>
    %c0_21 = arith.constant 0 : index
    %c0_22 = arith.constant 0 : index
    %31 = vector.load %arg2[%c0_21, %c0_22] : memref<8x16xf32, #tpu.memory_space<vmem>>, vector<8x16xf32>
    %32 = arith.mulf %30, %31 : vector<8x16xf32>
    %33 = arith.addf %25, %32 : vector<8x16xf32>
    %c0_23 = arith.constant 0 : index
    %c512 = arith.constant 512 : index
    %34 = vector.load %arg3[%c0_23, %c512] : memref<64x896xf32, #tpu.memory_space<vmem>>, vector<16x32xf32>
    %c0_24 = arith.constant 0 : index
    %c512_25 = arith.constant 512 : index
    %35 = vector.load %arg4[%c0_24, %c512_25] : memref<1x896xf32, #tpu.memory_space<vmem>>, vector<1x32xf32>
    %cst_26 = arith.constant dense<0.000000e+00> : vector<8x32xf32>
    %36 = tpu.matmul %33, %34, %cst_26 {dimension_numbers = #tpu.dot_dimension_numbers<[1], [0], [0], [1], [0, 0, 1, 1], [], []>} : vector<8x16xf32>, vector<16x32xf32>, vector<8x32xf32> -> vector<8x32xf32>
    %37 = vector.broadcast %35 : vector<1x32xf32> to vector<8x32xf32>
    %38 = arith.addf %36, %37 : vector<8x32xf32>
    %cst_27 = arith.constant 0.000000e+00 : f32
    %39 = vector.broadcast %cst_27 : f32 to vector<8x32xf32>
    %40 = arith.cmpf ogt, %38, %39 : vector<8x32xf32>
    %cst_28 = arith.constant 2.000000e-01 : f32
    %41 = vector.broadcast %cst_28 : f32 to vector<8x32xf32>
    %42 = arith.mulf %41, %38 : vector<8x32xf32>
    %43 = arith.select %40, %38, %42 : vector<8x32xi1>, vector<8x32xf32>
    %c0_29 = arith.constant 0 : index
    %c640 = arith.constant 640 : index
    %44 = vector.load %arg3[%c0_29, %c640] : memref<64x896xf32, #tpu.memory_space<vmem>>, vector<32x64xf32>
    %c0_30 = arith.constant 0 : index
    %c640_31 = arith.constant 640 : index
    %45 = vector.load %arg4[%c0_30, %c640_31] : memref<1x896xf32, #tpu.memory_space<vmem>>, vector<1x64xf32>
    %cst_32 = arith.constant dense<0.000000e+00> : vector<8x64xf32>
    %46 = tpu.matmul %43, %44, %cst_32 {dimension_numbers = #tpu.dot_dimension_numbers<[1], [0], [0], [1], [0, 0, 1, 1], [], []>} : vector<8x32xf32>, vector<32x64xf32>, vector<8x64xf32> -> vector<8x64xf32>
    %47 = vector.broadcast %45 : vector<1x64xf32> to vector<8x64xf32>
    %48 = arith.addf %46, %47 : vector<8x64xf32>
    %cst_33 = arith.constant 0.000000e+00 : f32
    %49 = vector.broadcast %cst_33 : f32 to vector<8x64xf32>
    %50 = arith.cmpf ogt, %48, %49 : vector<8x64xf32>
    %cst_34 = arith.constant 2.000000e-01 : f32
    %51 = vector.broadcast %cst_34 : f32 to vector<8x64xf32>
    %52 = arith.mulf %51, %48 : vector<8x64xf32>
    %53 = arith.select %50, %48, %52 : vector<8x64xi1>, vector<8x64xf32>
    %c0_35 = arith.constant 0 : index
    %c768 = arith.constant 768 : index
    %54 = vector.load %arg3[%c0_35, %c768] : memref<64x896xf32, #tpu.memory_space<vmem>>, vector<64x64xf32>
    %c0_36 = arith.constant 0 : index
    %c768_37 = arith.constant 768 : index
    %55 = vector.load %arg4[%c0_36, %c768_37] : memref<1x896xf32, #tpu.memory_space<vmem>>, vector<1x64xf32>
    %cst_38 = arith.constant dense<0.000000e+00> : vector<8x64xf32>
    %56 = tpu.matmul %53, %54, %cst_38 {dimension_numbers = #tpu.dot_dimension_numbers<[1], [0], [0], [1], [0, 0, 1, 1], [], []>} : vector<8x64xf32>, vector<64x64xf32>, vector<8x64xf32> -> vector<8x64xf32>
    %57 = vector.broadcast %55 : vector<1x64xf32> to vector<8x64xf32>
    %58 = arith.addf %56, %57 : vector<8x64xf32>
    %59 = arith.negf %58 : vector<8x64xf32>
    %60 = math.exp %59 : vector<8x64xf32>
    %cst_39 = arith.constant 1.000000e+00 : f32
    %61 = vector.broadcast %cst_39 : f32 to vector<8x64xf32>
    %62 = arith.addf %61, %60 : vector<8x64xf32>
    %63 = arith.divf %61, %62 : vector<8x64xf32>
    %c0_40 = arith.constant 0 : index
    %c0_41 = arith.constant 0 : index
    %64 = vector.load %arg5[%c0_40, %c0_41] : memref<8x64xf32, #tpu.memory_space<vmem>>, vector<8x64xf32>
    tpu.vector_store %arg5[%c0_40, %c0_41], %63 {strides = array<i32>} : memref<8x64xf32, #tpu.memory_space<vmem>>, vector<8x64xf32>,
    %c0_42 = arith.constant 0 : index
    %c0_43 = arith.constant 0 : index
    %65 = vector.load %arg6[%c0_42, %c0_43] : memref<8x16xf32, #tpu.memory_space<vmem>>, vector<8x16xf32>
    tpu.vector_store %arg6[%c0_42, %c0_43], %25 {strides = array<i32>} : memref<8x16xf32, #tpu.memory_space<vmem>>, vector<8x16xf32>,
    %c0_44 = arith.constant 0 : index
    %c0_45 = arith.constant 0 : index
    %66 = vector.load %arg7[%c0_44, %c0_45] : memref<8x16xf32, #tpu.memory_space<vmem>>, vector<8x16xf32>
    tpu.vector_store %arg7[%c0_44, %c0_45], %30 {strides = array<i32>} : memref<8x16xf32, #tpu.memory_space<vmem>>, vector<8x16xf32>,
    return
  }
  func.func @transform_0(%arg0: i32) -> (i32, i32) {
    %c0_i32 = arith.constant 0 : i32
    %c0_i32_0 = arith.constant 0 : i32
    return %arg0, %c0_i32 : i32, i32
  }
  func.func @transform_1(%arg0: i32) -> (i32, i32) {
    %c0_i32 = arith.constant 0 : i32
    %c0_i32_0 = arith.constant 0 : i32
    return %arg0, %c0_i32 : i32, i32
  }
  func.func @transform_2(%arg0: i32) -> (i32, i32) {
    %c0_i32 = arith.constant 0 : i32
    %c0_i32_0 = arith.constant 0 : i32
    %c0_i32_1 = arith.constant 0 : i32
    return %c0_i32, %c0_i32_0 : i32, i32
  }
  func.func @transform_3(%arg0: i32) -> (i32, i32) {
    %c0_i32 = arith.constant 0 : i32
    %c0_i32_0 = arith.constant 0 : i32
    %c0_i32_1 = arith.constant 0 : i32
    return %c0_i32, %c0_i32_0 : i32, i32
  }
  func.func @transform_4(%arg0: i32) -> (i32, i32) {
    %c0_i32 = arith.constant 0 : i32
    %c0_i32_0 = arith.constant 0 : i32
    return %arg0, %c0_i32 : i32, i32
  }
  func.func @transform_5(%arg0: i32) -> (i32, i32) {
    %c0_i32 = arith.constant 0 : i32
    %c0_i32_0 = arith.constant 0 : i32
    return %arg0, %c0_i32 : i32, i32
  }
  func.func @transform_6(%arg0: i32) -> (i32, i32) {
    %c0_i32 = arith.constant 0 : i32
    %c0_i32_0 = arith.constant 0 : i32
    return %arg0, %c0_i32 : i32, i32
  }
}

</mosaic_0001>

<bundles_post_ra>
// kernel: tpu_custom_call.1
= control target key start
LH: loop header
LB: loop body
LE: loop exit
PB: predicated region body
PF: predicated region fallthrough
CT: control target
= control target key end

     0   :  { %12 = vsyncpa [#allocation3], 0  ;;  %s1273_s0 = inlined_call_operand.hbm [shape: f32[8,64], index: 0, kind: input, shape index: {}]   ;;  %s1274_s1 = inlined_call_operand.hbm [shape: f32[8,16], index: 1, kind: input, shape index: {}]   ;;  %s1275_s2 = inlined_call_operand.hbm [shape: f32[64,896], index: 2, kind: input, shape index: {}]   ;;  %s1276_s3 = inlined_call_operand.vmem [shape: f32[1,896], index: 3, kind: input, shape index: {}]   ;;  %s1277_s4 = inlined_call_operand.hbm [shape: f32[8,64], index: 4, kind: output, shape index: {0}]   ;;  %s1278_s5 = inlined_call_operand.hbm [shape: f32[8,16], index: 5, kind: output, shape index: {1}]   ;;  %s1279_s6 = inlined_call_operand.hbm [shape: f32[8,16], index: 6, kind: output, shape index: {2}]  }
   0x1   :  { %13 = vsyncpa [#allocation6], 0 }
   0x2   :  { %14 = vsyncpa [#allocation4], 0 }
   0x3   :  { %15 = vsyncpa [#allocation10], 0  ;;  %s1094_s21 = smov [#allocation5]   ;;  %s1095_s23 = smov [#allocation2]  }
   0x4   :  { %s32_s22 = sshll.u32 %s1094_s21, 4  ;;  %s22_s24 = sshll.u32 %s1095_s23, 4  ;;  %s33_s22 = int_to_ptr.vmem [resolvable:$true] %s32_s22  ;;  %s23_s24 = int_to_ptr.vmem [resolvable:$true] %s22_s24 }
   0x5   :  { %s954_s27 = scalar_lea.hbm %s1274_s1, 128 }
   0x6   :  { %p955_p0 = scmp.ne.s32.totalorder %s1274_s1, %s954_s27  ;;  %p958_p1 = scmp.lt.u32.totalorder %s954_s27, %s1274_s1 }
   0x8   :  { %p960_p2 = pnand %p958_p1, %p955_p0 }
   0xa   :  { %963 = shalt.err (!%p960_p2)
}
   0xb   :  { %s964_s8 = scalar_lea.vmem %s33_s22, 128  ;;  %p969_p4 = scmp.lt.s32.totalorder %s33_s22, %s33_s22 }
   0xc   :  { %p965_p3 = scmp.ne.s32.totalorder %s33_s22, %s964_s8  ;;  %p970_p5 = scmp.lt.s32.totalorder %s964_s8, %s964_s8 }
   0xe   :  { %p971_p6 = por %p970_p5, %p969_p4 }
  0x10   :  { %p972_p7 = pnand %p971_p6, %p965_p3 }
  0x12   :  { %975 = shalt.err (!%p972_p7)
}
  0x13   :  { %35 = dma.hbm_to_vmem [thread:$0]  %s1274_s1, 128, %s33_s22, [#allocation6]  }
  0x14   :  { %s976_s13 = scalar_lea.hbm %s1273_s0, 128 }
  0x15   :  { %p977_p8 = scmp.ne.s32.totalorder %s1273_s0, %s976_s13  ;;  %p980_p9 = scmp.lt.u32.totalorder %s976_s13, %s1273_s0 }
  0x17   :  { %p982_p10 = pnand %p980_p9, %p977_p8 }
  0x19   :  { %985 = shalt.err (!%p982_p10)
}
  0x1a   :  { %s986_s18 = scalar_lea.vmem %s23_s24, 128  ;;  %p991_p12 = scmp.lt.s32.totalorder %s23_s24, %s23_s24 }
  0x1b   :  { %p987_p11 = scmp.ne.s32.totalorder %s23_s24, %s986_s18  ;;  %p992_p13 = scmp.lt.s32.totalorder %s986_s18, %s986_s18 }
  0x1d   :  { %p993_p0 = por %p992_p13, %p991_p12 }
  0x1f   :  { %p994_p1 = pnand %p993_p0, %p987_p11 }
  0x21   :  { %997 = shalt.err (!%p994_p1)
}
  0x22   :  { %25 = dma.hbm_to_vmem [thread:$0]  %s1273_s0, 128, %s23_s24, [#allocation3]  }
  0x23   :  { %s1096_s20 = smov [#allocation7]   ;;  %s998_s25 = scalar_lea.hbm %s1275_s2, 7168 }
  0x24   :  { %s41_s21 = sshll.u32 %s1096_s20, 4  ;;  %p999_p2 = scmp.ne.s32.totalorder %s1275_s2, %s998_s25  ;;  %s42_s21 = int_to_ptr.vmem [resolvable:$true] %s41_s21 }
  0x25   :  { %p1002_p3 = scmp.lt.u32.totalorder %s998_s25, %s1275_s2 }
  0x27   :  { %p1004_p4 = pnand %p1002_p3, %p999_p2 }
  0x29   :  { %1007 = shalt.err (!%p1004_p4)
}
  0x2a   :  { %s1008_s30 = scalar_lea.vmem %s42_s21, 7168  ;;  %p1013_p6 = scmp.lt.s32.totalorder %s42_s21, %s42_s21 }
  0x2b   :  { %p1009_p5 = scmp.ne.s32.totalorder %s42_s21, %s1008_s30  ;;  %p1014_p7 = scmp.lt.s32.totalorder %s1008_s30, %s1008_s30 }
  0x2d   :  { %p1015_p8 = por %p1014_p7, %p1013_p6 }
  0x2f   :  { %p1016_p9 = pnand %p1015_p8, %p1009_p5 }
  0x31   :  { %1019 = shalt.err (!%p1016_p9)
}
  0x32   :  { %s1097_s0 = smov 896   ;;  %s1098_s24 = smov 56  }
  0x33   :  { %47 = dma.hbm_to_vmem [thread:$0]  %s1275_s2, 7168, %s42_s21, [#allocation6], %s1097_s0, %s1097_s0, %s1098_s24  }
  0x34   :  { %1086 = dma.done.wait [#allocation3], 128  }
  0x35   :  { %1087 = vsyncadd [#allocation3], 4294967168 }
  0x36   :  { %1088 = dma.done.wait [#allocation6], 7296  }
  0x37   :  { %1089 = vsyncadd [#allocation6], 4294960000  ;;  %v1099_v0 = vmov 0.0|0.0   ;;  %vm1100_vm0 = vmmov 0   ;;  %v1101_v1 = vmov 0.0   ;;  %v60_v2 = vld [vmem:[#allocation7] sm:$0xff] }
  0x38   :  { %882 = vmatprep.subr.bf16.mxu0 %v1099_v0  ;;  %801 = vmatprep.mubr.msk.f32.mxu0 %vm1100_vm0, %v1101_v1  ;;  %v61_v3 = vld [vmem:[#allocation7 + $0x38] sm:$0xff]  ;;  %v62_v4 = vld [vmem:[#allocation7 + $0x70] sm:$0xff]  ;;  %v63_v6 = vld [vmem:[#allocation7 + $0xa8] sm:$0xff]  ;;  %vm75_vm1 = vcmask 523264   ;;  %vm254_vm4 = vcmask 261120   ;;  %vm421_vm5 = vcmask 130048  }
  0x39   :  { %894 = vmatprep.subr.bf16.mxu1 %v1099_v0  ;;  %820 = vmatprep.mubr.msk.f32.mxu1 %vm1100_vm0, %v1101_v1  ;;  %v883_v5 = vpack.c.bf16 %v61_v3, %v60_v2  ;;  %v886_v7 = vpack.c.bf16 %v63_v6, %v62_v4  ;;  %v152_v8 = vld [vmem:[#allocation7 + $0x8] sm:$0xff]  ;;  %v153_v9 = vld [vmem:[#allocation7 + $0x40] sm:$0xff]  ;;  %v154_v10 = vld [vmem:[#allocation7 + $0x78] sm:$0xff]  ;;  %s1102_s19 = smov [#allocation9]  }
  0x3a   :  { %v64_v11 = vld [vmem:[#allocation7 + $0xe0] sm:$0xff]  ;;  %v65_v12 = vld [vmem:[#allocation7 + $0x118] sm:$0xff]  ;;  %v895_v13 = vpack.c.bf16 %v153_v9, %v152_v8  ;;  %v155_v14 = vld [vmem:[#allocation7 + $0xb0] sm:$0xff]  ;;  %s698_s20 = sshll.u32 %s1102_s19, 4  ;;  %s699_s20 = int_to_ptr.vmem [resolvable:$true] %s698_s20 }
  0x3b   :  { %884 = vmatpush3.bf16.msra.mxu0 %v883_v5  ;;  %v898_v15 = vpack.c.bf16 %v155_v14, %v154_v10  ;;  %v889_v16 = vpack.c.bf16 %v65_v12, %v64_v11  ;;  %v156_v17 = vld [vmem:[#allocation7 + $0xe8] sm:$0xff]  ;;  %v157_v18 = vld [vmem:[#allocation7 + $0x120] sm:$0xff]  ;;  %v66_v19 = vld [vmem:[#allocation7 + $0x150] sm:$0xff]  ;;  %s1020_s21 = scalar_lea.vmem %s699_s20, 128  ;;  %p1025_p11 = scmp.lt.s32.totalorder %s699_s20, %s699_s20 }
  0x3c   :  { %885 = vmatprep.subr.bf16.mxu0 %v1099_v0  ;;  %896 = vmatpush3.bf16.msra.mxu1 %v895_v13  ;;  %v67_v20 = vld [vmem:[#allocation7 + $0x188] sm:$0xff]  ;;  %v901_v21 = vpack.c.bf16 %v157_v18, %v156_v17  ;;  %v59_v23 = vld [vmem:[#allocation2] sm:$0xff]  ;;  %v158_v24 = vld [vmem:[#allocation7 + $0x158] sm:$0xff]  ;;  %p1021_p10 = scmp.ne.s32.totalorder %s699_s20, %s1020_s21  ;;  %p1026_p12 = scmp.lt.s32.totalorder %s1020_s21, %s1020_s21 }
  0x3d   :  { %897 = vmatprep.subr.bf16.mxu1 %v1099_v0  ;;  %v892_v22 = vpack.c.bf16 %v67_v20, %v66_v19  ;;  %v159_v25 = vld [vmem:[#allocation7 + $0x190] sm:$0xff]  ;;  %v244_v30 = vld [vmem:[#allocation7 + $0x48] sm:$0xff]  ;;  %v245_v36 = vld [vmem:[#allocation7 + $0x80] sm:$0xff] }
  0x3e   :  { %v904_v26 = vpack.c.bf16 %v159_v25, %v158_v24  ;;  %v725_v27 = vld [vmem:[%s1276_s3] ss:$0 sm:$0xff]  ;;  %v246_v37 = vld [vmem:[#allocation7 + $0xb8] sm:$0xff]  ;;  %v727_v39 = vld [vmem:[%s1276_s3 + $0x1] ss:$0 sm:$0xff]  ;;  %p1027_p13 = por %p1026_p12, %p1025_p11 }
  0x3f   :  { %887 = vmatpush3.bf16.msra.mxu0 %v886_v7  ;;  %v243_v29 = vld [vmem:[#allocation7 + $0x10] sm:$0xff]  ;;  %v910_v38 = vpack.c.bf16 %v246_v37, %v245_v36  ;;  %v328_v41 = vld [vmem:[#allocation7 + $0x18] sm:$0xff]  ;;  %v330_v47 = vld [vmem:[#allocation7 + $0x88] sm:$0xff] }
  0x40   :  { %888 = vmatprep.subr.bf16.mxu0 %v1099_v0  ;;  %899 = vmatpush3.bf16.msra.mxu1 %v898_v15  ;;  %v907_v34 = vpack.c.bf16 %v244_v30, %v243_v29  ;;  %v329_v42 = vld [vmem:[#allocation7 + $0x50] sm:$0xff]  ;;  %v331_v48 = vld [vmem:[#allocation7 + $0xc0] sm:$0xff]  ;;  %v413_v52 = vld [vmem:[#allocation7 + $0x58] sm:$0xff]  ;;  %p1028_p0 = pnand %p1027_p13, %p1021_p10 }
  0x41   :  { %900 = vmatprep.subr.bf16.mxu1 %v1099_v0  ;;  %v913_v46 = vpack.c.bf16 %v329_v42, %v328_v41  ;;  %v916_v50 = vpack.c.bf16 %v331_v48, %v330_v47  ;;  %v412_v51 = vld [vmem:[#allocation7 + $0x20] sm:$0xff]  ;;  %v498_v54 = vld [vmem:[#allocation7 + $0x28] sm:$0xff]  ;;  %v729_v57 = vld [vmem:[%s1276_s3 + $0x2] ss:$0 sm:$0xff] }
  0x42   :  { %v919_v53 = vpack.c.bf16 %v413_v52, %v412_v51  ;;  %v499_v55 = vld [vmem:[#allocation7 + $0x60] sm:$0xff]  ;;  %v731_v61 = vld [vmem:[%s1276_s3 + $0x3] ss:$0 sm:$0xff]  ;;  %v409_v63 = vld [vmem:[#allocation5] sm:$0xff] }
  0x43   :  { %890 = vmatpush3.bf16.msra.mxu0 %v889_v16  ;;  %v922_v56 = vpack.c.bf16 %v499_v55, %v498_v54  ;;  %v500_v6 = vld [vmem:[#allocation7 + $0x98] sm:$0xff]  ;;  %v501_v7 = vld [vmem:[#allocation7 + $0xd0] sm:$0xff]  ;;  %v586_v10 = vld [vmem:[#allocation7 + $0x68] sm:$0xff] }
  0x44   :  { %891 = vmatprep.subr.bf16.mxu0 %v1099_v0  ;;  %902 = vmatpush3.bf16.msra.mxu1 %v901_v21  ;;  %v925_v8 = vpack.c.bf16 %v501_v7, %v500_v6  ;;  %v585_v9 = vld [vmem:[#allocation7 + $0x30] sm:$0xff]  ;;  %v587_v11 = vld [vmem:[#allocation7 + $0xa0] sm:$0xff]  ;;  %v588_v13 = vld [vmem:[#allocation7 + $0xd8] sm:$0xff] }
  0x45   :  { %903 = vmatprep.subr.bf16.mxu1 %v1099_v0  ;;  %v928_v12 = vpack.c.bf16 %v586_v10, %v585_v9  ;;  %v931_v14 = vpack.c.bf16 %v588_v13, %v587_v11  ;;  %v589_v15 = vld [vmem:[#allocation7 + $0x110] sm:$0xff]  ;;  %v590_v16 = vld [vmem:[#allocation7 + $0x148] sm:$0xff]  ;;  %v592_v24 = vld [vmem:[#allocation7 + $0x1b8] sm:$0xff] }
  0x46   :  { %v934_v17 = vpack.c.bf16 %v590_v16, %v589_v15 }
  0x47   :  { %893 = vmatpush3.bf16.msra.mxu0 %v892_v22 }
  0x48   :  { %918 = vmatprep.subr.bf16.mxu0 %v1099_v0  ;;  %905 = vmatpush3.bf16.msra.mxu1 %v904_v26 }
  0x49   :  { %906 = vmatprep.subr.bf16.mxu1 %v1099_v0 }
  0x4a   :  { %802 = vmatmul.mubr.msk.f32.vlgmr.msra.gmra.mrb[0].mxu0 %vm75_vm1, %v59_v23  ;;  %v591_v23 = vld [vmem:[#allocation7 + $0x180] sm:$0xff] }
  0x4b   :  { %849 = vmatprep.mubr.msk.f32.mxu0 %vm1100_vm0, %v1101_v1  ;;  %920 = vmatpush3.bf16.msra.mxu0 %v919_v53  ;;  %v937_v25 = vpack.c.bf16 %v592_v24, %v591_v23 }
  0x4c   :  { %927 = vmatprep.subr.bf16.mxu0 %v1099_v0 }
 0x11d   :  { %v145_v28 = vpop.f32.mrb[0].mxu0 }
 0x11e   :  { %v146_v31 = vadd.f32 %v725_v27, %v145_v28  ;;  %v803_v32 = vpop.f32.mrb[1].mxu0 }
 0x120   :  { %vm149_vm2 = vcmp.gt.f32.partialorder %v146_v31, 0.0  ;;  %v150_v33 = vmul.f32 0.2, %v146_v31 }
 0x122   :  { %v151_v35 = vsel %vm149_vm2, %v146_v31, %v150_v33 }
 0x123   :  { %821 = vmatmul.mubr.msk.f32.vlgmr.msra.gmra.mrb[0].mxu1 %vm75_vm1, %v151_v35 }
 0x124   :  { %908 = vmatpush3.bf16.msra.mxu1 %v907_v34  ;;  %831 = vmatprep.mubr.msk.f32.mxu1 %vm1100_vm0, %v1101_v1 }
 0x125   :  { %909 = vmatprep.subr.bf16.mxu1 %v1099_v0 }
 0x128   :  { %911 = vmatpush3.bf16.msra.mxu1 %v910_v38 }
 0x129   :  { %912 = vmatprep.subr.bf16.mxu1 %v1099_v0 }
 0x1f6   :  { %v236_v40 = vpop.f32.mrb[0].mxu1 }
 0x1f7   :  { %v237_v43 = vadd.f32 %v727_v39, %v236_v40  ;;  %v822_v44 = vpop.f32.mrb[1].mxu1 }
 0x1f9   :  { %vm240_vm3 = vcmp.gt.f32.partialorder %v237_v43, 0.0  ;;  %v241_v45 = vmul.f32 0.2, %v237_v43 }
 0x1fb   :  { %v242_v49 = vsel %vm240_vm3, %v237_v43, %v241_v45 }
 0x1fc   :  { %832 = vmatmul.mubr.msk.f32.vlgmr.msra.gmra.mrb[2].mxu1 %vm254_vm4, %v242_v49 }
 0x1fd   :  { %914 = vmatpush3.bf16.msra.mxu1 %v913_v46  ;;  %842 = vmatprep.mubr.msk.f32.mxu1 %vm1100_vm0, %v1101_v1 }
 0x1fe   :  { %915 = vmatprep.subr.bf16.mxu1 %v1099_v0 }
 0x201   :  { %917 = vmatpush3.bf16.msra.mxu1 %v916_v50 }
 0x202   :  { %921 = vmatprep.subr.bf16.mxu1 %v1099_v0 }
 0x204   :  { %843 = vmatmul.mubr.msk.f32.vlgmr.msra.gmra.mrb[4].mxu1 %vm254_vm4, %v242_v49 }
 0x205   :  { %860 = vmatprep.mubr.msk.f32.mxu1 %vm1100_vm0, %v1101_v1  ;;  %923 = vmatpush3.bf16.msra.mxu1 %v922_v56 }
 0x206   :  { %924 = vmatprep.subr.bf16.mxu1 %v1099_v0 }
 0x209   :  { %926 = vmatpush3.bf16.msra.mxu1 %v925_v8 }
 0x2cf   :  { %v324_v58 = vpop.f32.mrb[2].mxu1 }
 0x2d0   :  { %v325_v59 = vadd.f32 %v729_v57, %v324_v58  ;;  %v833_v60 = vpop.f32.mrb[3].mxu1 }
 0x2d2   :  { %680 = vst.msk [vmem:[#allocation9] sm:$0xff] %vm421_vm5, %v325_v59 }
 0x2d7   :  { %v405_v62 = vpop.f32.mrb[4].mxu1 }
 0x2d8   :  { %v406_v2 = vadd.f32 %v731_v61, %v405_v62  ;;  %v844_v3 = vpop.f32.mrb[5].mxu1 }
 0x2da   :  { %v410_v4 = vmul.f32 %v409_v63, %v406_v2  ;;  %681 = vst.msk [vmem:[#allocation11] sm:$0xff] %vm421_vm5, %v406_v2 }
 0x2dc   :  { %v411_v5 = vadd.f32 %v410_v4, %v325_v59 }
 0x2de   :  { %850 = vmatmul.mubr.msk.f32.vlgmr.msra.gmra.mrb[2].mxu0 %vm421_vm5, %v411_v5 }
 0x2df   :  { %879 = vmatprep.mubr.msk.f32.mxu0 %vm1100_vm0, %v1101_v1  ;;  %929 = vmatpush3.bf16.msra.mxu0 %v928_v12  ;;  %v733_v1 = vld [vmem:[%s1276_s3 + $0x4] ss:$0 sm:$0xff] }
 0x2e0   :  { %930 = vmatprep.subr.bf16.mxu0 %v1099_v0 }
 0x2e3   :  { %932 = vmatpush3.bf16.msra.mxu0 %v931_v14 }
 0x2e4   :  { %933 = vmatprep.subr.bf16.mxu0 %v1099_v0 }
 0x2e7   :  { %935 = vmatpush3.bf16.msra.mxu0 %v934_v17 }
 0x2e8   :  { %936 = vmatprep.subr.bf16.mxu0 %v1099_v0  ;;  %v735_v0 = vld [vmem:[%s1276_s3 + $0x5] ss:$0 sm:$0xff] }
 0x2eb   :  { %938 = vmatpush3.bf16.msra.mxu0 %v937_v25 }
 0x3b1   :  { %v491_v18 = vpop.f32.mrb[2].mxu0 }
 0x3b2   :  { %v492_v19 = vadd.f32 %v733_v1, %v491_v18  ;;  %v851_v20 = vpop.f32.mrb[3].mxu0 }
 0x3b4   :  { %vm495_vm6 = vcmp.gt.f32.partialorder %v492_v19, 0.0  ;;  %v496_v21 = vmul.f32 0.2, %v492_v19 }
 0x3b6   :  { %v497_v22 = vsel %vm495_vm6, %v492_v19, %v496_v21 }
 0x3b7   :  { %861 = vmatmul.mubr.msk.f32.vlgmr.msra.gmra.mrb[6].mxu1 %vm254_vm4, %v497_v22 }
 0x48a   :  { %v578_v26 = vpop.f32.mrb[6].mxu1 }
 0x48b   :  { %v579_v27 = vadd.f32 %v735_v0, %v578_v26  ;;  %v862_v28 = vpop.f32.mrb[7].mxu1 }
 0x48d   :  { %vm582_vm7 = vcmp.gt.f32.partialorder %v579_v27, 0.0  ;;  %v583_v29 = vmul.f32 0.2, %v579_v27 }
 0x48f   :  { %v584_v30 = vsel %vm582_vm7, %v579_v27, %v583_v29 }
 0x490   :  { %880 = vmatmul.mubr.msk.f32.vlgmr.msra.gmra.mrb[4].mxu0 %vm75_vm1, %v584_v30 }
 0x491   :  { %1031 = shalt.err (!%p1028_p0)
}
 0x492   :  { %s1032_s25 = scalar_lea.hbm %s1278_s5, 128 }
 0x493   :  { %p1033_p1 = scmp.ne.s32.totalorder %s1278_s5, %s1032_s25  ;;  %p1036_p2 = scmp.lt.u32.totalorder %s1032_s25, %s1278_s5 }
 0x495   :  { %p1038_p3 = pnand %p1036_p2, %p1033_p1 }
 0x497   :  { %1041 = shalt.err (!%p1038_p3)
}
 0x498   :  { %701 = dma.vmem_to_hbm [thread:$0]  %s699_s20, 128, %s1278_s5, [#allocation10]  }
 0x499   :  { %s1103_s24 = smov [#allocation11]  }
 0x49a   :  { %s708_s7 = sshll.u32 %s1103_s24, 4  ;;  %s709_s7 = int_to_ptr.vmem [resolvable:$true] %s708_s7 }
 0x49b   :  { %s1042_s8 = scalar_lea.vmem %s709_s7, 128  ;;  %p1047_p5 = scmp.lt.s32.totalorder %s709_s7, %s709_s7 }
 0x49c   :  { %p1043_p4 = scmp.ne.s32.totalorder %s709_s7, %s1042_s8  ;;  %p1048_p6 = scmp.lt.s32.totalorder %s1042_s8, %s1042_s8 }
 0x49e   :  { %p1049_p7 = por %p1048_p6, %p1047_p5 }
 0x4a0   :  { %p1050_p8 = pnand %p1049_p7, %p1043_p4 }
 0x4a2   :  { %1053 = shalt.err (!%p1050_p8)
}
 0x4a3   :  { %s1054_s10 = scalar_lea.hbm %s1279_s6, 128 }
 0x4a4   :  { %p1055_p9 = scmp.ne.s32.totalorder %s1279_s6, %s1054_s10  ;;  %p1058_p10 = scmp.lt.u32.totalorder %s1054_s10, %s1279_s6 }
 0x4a6   :  { %p1060_p11 = pnand %p1058_p10, %p1055_p9 }
 0x4a8   :  { %1063 = shalt.err (!%p1060_p11)
}
 0x4a9   :  { %711 = dma.vmem_to_hbm [thread:$0]  %s709_s7, 128, %s1279_s6, [#allocation10]   ;;  %v737_v31 = vld [vmem:[%s1276_s3 + $0x6] ss:$0 sm:$0xff] }
 0x4aa   :  { %s1104_s18 = smov [#allocation8]  }
 0x4ab   :  { %s688_s1 = sshll.u32 %s1104_s18, 4  ;;  %s689_s1 = int_to_ptr.vmem [resolvable:$true] %s688_s1 }
 0x4ac   :  { %s1064_s19 = scalar_lea.vmem %s689_s1, 128  ;;  %p1069_p13 = scmp.lt.s32.totalorder %s689_s1, %s689_s1 }
 0x4ad   :  { %p1065_p12 = scmp.ne.s32.totalorder %s689_s1, %s1064_s19  ;;  %p1070_p0 = scmp.lt.s32.totalorder %s1064_s19, %s1064_s19 }
 0x4af   :  { %p1071_p1 = por %p1070_p0, %p1069_p13 }
 0x4b1   :  { %p1072_p2 = pnand %p1071_p1, %p1065_p12 }
 0x563   :  { %v669_v32 = vpop.f32.mrb[4].mxu0 }
 0x564   :  { %v670_v33 = vadd.f32 %v737_v31, %v669_v32  ;;  %v881_v34 = vpop.f32.mrb[5].mxu0 }
 0x566   :  { %v739_v35 = vmul.f32 -1.442695, %v670_v33 }
 0x568   :  { %950 = vpow2.f32 %v739_v35 }
 0x572   :  { %v951_v36 = vpop.eup %950 }
 0x573   :  { %v676_v37 = vadd.f32 1.0, %v951_v36 }
 0x575   :  { %952 = vrcp.f32 %v676_v37 }
 0x57f   :  { %v953_v38 = vpop.eup %952 }
 0x580   :  { %679 = vst.msk [vmem:[#allocation8] sm:$0xff] %vm75_vm1, %v953_v38 }
 0x581   :  { %1075 = shalt.err (!%p1072_p2)
}
 0x582   :  { %s1076_s20 = scalar_lea.hbm %s1277_s4, 128 }
 0x583   :  { %p1077_p3 = scmp.ne.s32.totalorder %s1277_s4, %s1076_s20  ;;  %p1080_p4 = scmp.lt.u32.totalorder %s1076_s20, %s1277_s4 }
 0x585   :  { %p1082_p5 = pnand %p1080_p4, %p1077_p3 }
 0x587   :  { %1085 = shalt.err (!%p1082_p5)
}
 0x588   :  { %691 = dma.vmem_to_hbm [thread:$0]  %s689_s1, 128, %s1277_s4, [#allocation4]  }
 0x589   :  { %1090 = dma.done.wait [#allocation4], 128  }
 0x58a   :  { %1091 = vsyncadd [#allocation4], 4294967168 }
 0x58b   :  { %1092 = dma.done.wait [#allocation10], 256  }
 0x58c   :  { %1093 = vsyncadd [#allocation10], 4294967040 }
 0x58d   :  { %721 = vsyncpa [#allocation3], 1 }
 0x58e   :  { %722 = vsyncpa [#allocation6], 1 }
 0x58f   :  { %723 = vsyncpa [#allocation4], 1 }
 0x590   :  { %724 = vsyncpa [#allocation10], 1 }

</bundles_post_ra>
